<compile_context>
chip_gen: v6e
topology: v6e:2x2x1
jax: 0.10.0
libtpu: 0.0.40
codegen_flags: <defaults>
</compile_context>

<pallas_src>
import jax
import jax.numpy as jnp
from jax.experimental import pallas as pl
from jax.experimental.pallas import tpu as pltpu

EPS = 1e-5


def _layernorm_kernel(x_ref, scale_ref, shift_ref, o_ref):
    # x_ref: (ROW_TILE, D); scale_ref / shift_ref: (1, D)
    x = x_ref[...].astype(jnp.float32)
    d = x.shape[-1]
    # One-pass statistics: s1 = sum(x), s2 = sum(x*x).
    s1 = jnp.sum(x, axis=-1, keepdims=True)
    s2 = jnp.sum(x * x, axis=-1, keepdims=True)
    mean = s1 * (1.0 / d)
    # Unbiased variance (ddof=1) to match torch.var() default in the module.
    var = (s2 - s1 * mean) * (1.0 / (d - 1))
    var = jnp.maximum(var, 0.0)  # guard tiny negative from cancellation
    inv_std = jax.lax.rsqrt(var + EPS)
    scale = scale_ref[...].astype(jnp.float32)
    shift = shift_ref[...].astype(jnp.float32)
    o_ref[...] = ((x - mean) * inv_std * scale + shift).astype(o_ref.dtype)


def _round_up(n, m):
    return ((n + m - 1) // m) * m


def layer_norm(x, scale, shift, *, row_tile=None, target_block_bytes=2 << 20):
    """LayerNorm over the last axis of x, with per-feature scale & shift."""
    orig_shape = x.shape
    emb_dim = orig_shape[-1]
    rows = 1
    for s in orig_shape[:-1]:
        rows *= s

    x2 = x.reshape(rows, emb_dim)
    scale2 = scale.reshape(1, emb_dim).astype(jnp.float32)
    shift2 = shift.reshape(1, emb_dim).astype(jnp.float32)

    itemsize = jnp.dtype(x.dtype).itemsize
    # Sublane packing multiple: 8 rows for 32-bit, 16 for bf16, 32 for 8-bit.
    sublane_mult = max(8, 32 // itemsize)

    if row_tile is None:
        # Largest row tile whose input block is ~target_block_bytes.
        row_tile = max(1, target_block_bytes // max(1, emb_dim * itemsize))
        row_tile = max(sublane_mult, (row_tile // sublane_mult) * sublane_mult)
        row_tile = min(row_tile, 1024)
    # Never exceed the row count (rounded up to the sublane multiple) and keep
    # the block row dim sublane-aligned so the (8,128) tiling rule is met.
    row_tile = min(row_tile, _round_up(rows, sublane_mult))
    row_tile = max(sublane_mult, _round_up(row_tile, sublane_mult))

    grid = (pl.cdiv(rows, row_tile),)

    # VMEM budget: 2x double-buffered input + 2x output blocks, f32 compute
    # temps, params, plus margin.  Floor 32 MiB, cap 64 MiB (v7x physical).
    blk_in = row_tile * emb_dim * itemsize
    blk_out = blk_in
    blk_f32 = row_tile * emb_dim * 4
    vmem_limit = 2 * blk_in + 2 * blk_out + 4 * blk_f32 + 4 * emb_dim * 4 + (1 << 20)
    vmem_limit = int(min(max(vmem_limit, 32 << 20), 64 << 20))

    # TODO(synk): for emb_dim < 128 (like the toy D=32 below) the lane axis is
    # under-utilized (<=25%); a lane-dense repack of rows into lanes would be
    # needed to reach the store-path roofline for such shapes.
    out = pl.pallas_call(
        _layernorm_kernel,
        out_shape=jax.ShapeDtypeStruct((rows, emb_dim), x.dtype),
        grid_spec=pltpu.PrefetchScalarGridSpec(
            num_scalar_prefetch=0,
            grid=grid,
            in_specs=[
                pl.BlockSpec((row_tile, emb_dim), lambda i: (i, 0)),
                pl.BlockSpec((1, emb_dim), lambda i: (0, 0)),
                pl.BlockSpec((1, emb_dim), lambda i: (0, 0)),
            ],
            out_specs=pl.BlockSpec((row_tile, emb_dim), lambda i: (i, 0)),
        ),
        compiler_params=pltpu.CompilerParams(
            dimension_semantics=("parallel",),
            vmem_limit_bytes=vmem_limit,
        ),
    )(x2, scale2, shift2)

    return out.reshape(orig_shape)


if __name__ == "__main__":
    # Small shapes consistent with the module: (batch=2, seq=8, emb_dim=32)
    batch, seq, emb_dim = 2, 8, 32
    key = jax.random.PRNGKey(0)
    x = jax.random.normal(key, (batch, seq, emb_dim), dtype=jnp.float32)

    # Deterministic parameter init, matching nn.Parameter(torch.ones/zeros)
    scale = jnp.ones((emb_dim,), dtype=jnp.float32)
    shift = jnp.zeros((emb_dim,), dtype=jnp.float32)

    out = layer_norm(x, scale, shift)
    out = jax.block_until_ready(out)

    # Pure-JAX reference (torch.var default unbiased=True -> ddof=1)
    mean = jnp.mean(x, axis=-1, keepdims=True)
    var = jnp.var(x, axis=-1, keepdims=True, ddof=1)
    ref = scale * ((x - mean) / jnp.sqrt(var + EPS)) + shift
    assert jnp.allclose(out, ref, atol=1e-5, rtol=1e-5), "mismatch vs reference"

    print("KERNEL_OK")
</pallas_src>

<mosaic_0001>
module attributes {stable_mosaic.version = 11 : i64} {
  func.func @_layernorm_kernel(%arg0: i32, %arg1: memref<16x32xf32, #tpu.memory_space<vmem>>, %arg2: memref<1x32xf32, #tpu.memory_space<vmem>>, %arg3: memref<1x32xf32, #tpu.memory_space<vmem>>, %arg4: memref<16x32xf32, #tpu.memory_space<vmem>>) attributes {dimension_semantics = [#tpu.dimension_semantics<parallel>], iteration_bounds = array<i64: 1>, scalar_prefetch = 0 : i64, scratch_operands = 0 : i64, tpu.core_type = #tpu.core_type<tc>, window_params = [{transform_indices = @transform_0, window_bounds = array<i64: 16, 32>}, {pipeline_mode = #tpu.pipeline_mode<synchronous>, transform_indices = @transform_1, window_bounds = array<i64: 1, 32>}, {pipeline_mode = #tpu.pipeline_mode<synchronous>, transform_indices = @transform_2, window_bounds = array<i64: 1, 32>}, {transform_indices = @transform_3, window_bounds = array<i64: 16, 32>}]} {
    %c0 = arith.constant 0 : index
    %c0_0 = arith.constant 0 : index
    %0 = vector.load %arg1[%c0, %c0_0] : memref<16x32xf32, #tpu.memory_space<vmem>>, vector<16x32xf32>
    %cst = arith.constant dense<0.000000e+00> : vector<16xf32>
    %1 = vector.multi_reduction <add>, %0, %cst [1] : vector<16x32xf32> to vector<16xf32>
    %2 = vector.shape_cast %1 : vector<16xf32> to vector<16x1xf32>
    %3 = arith.mulf %0, %0 : vector<16x32xf32>
    %cst_1 = arith.constant dense<0.000000e+00> : vector<16xf32>
    %4 = vector.multi_reduction <add>, %3, %cst_1 [1] : vector<16x32xf32> to vector<16xf32>
    %5 = vector.shape_cast %4 : vector<16xf32> to vector<16x1xf32>
    %cst_2 = arith.constant 3.125000e-02 : f32
    %6 = vector.broadcast %cst_2 : f32 to vector<16x1xf32>
    %7 = arith.mulf %2, %6 : vector<16x1xf32>
    %8 = arith.mulf %2, %7 : vector<16x1xf32>
    %9 = arith.subf %5, %8 : vector<16x1xf32>
    %cst_3 = arith.constant 0.0322580636 : f32
    %10 = vector.broadcast %cst_3 : f32 to vector<16x1xf32>
    %11 = arith.mulf %9, %10 : vector<16x1xf32>
    %cst_4 = arith.constant 0.000000e+00 : f32
    %12 = vector.broadcast %cst_4 : f32 to vector<16x1xf32>
    %13 = arith.maximumf %11, %12 : vector<16x1xf32>
    %cst_5 = arith.constant 9.99999974E-6 : f32
    %14 = vector.broadcast %cst_5 : f32 to vector<16x1xf32>
    %15 = arith.addf %13, %14 : vector<16x1xf32>
    %16 = math.rsqrt %15 : vector<16x1xf32>
    %c0_6 = arith.constant 0 : index
    %c0_7 = arith.constant 0 : index
    %17 = vector.load %arg2[%c0_6, %c0_7] : memref<1x32xf32, #tpu.memory_space<vmem>>, vector<1x32xf32>
    %c0_8 = arith.constant 0 : index
    %c0_9 = arith.constant 0 : index
    %18 = vector.load %arg3[%c0_8, %c0_9] : memref<1x32xf32, #tpu.memory_space<vmem>>, vector<1x32xf32>
    %19 = vector.broadcast %7 : vector<16x1xf32> to vector<16x32xf32>
    %20 = arith.subf %0, %19 : vector<16x32xf32>
    %21 = vector.broadcast %16 : vector<16x1xf32> to vector<16x32xf32>
    %22 = arith.mulf %20, %21 : vector<16x32xf32>
    %23 = vector.broadcast %17 : vector<1x32xf32> to vector<16x32xf32>
    %24 = arith.mulf %22, %23 : vector<16x32xf32>
    %25 = vector.broadcast %18 : vector<1x32xf32> to vector<16x32xf32>
    %26 = arith.addf %24, %25 : vector<16x32xf32>
    %c0_10 = arith.constant 0 : index
    %c0_11 = arith.constant 0 : index
    %27 = vector.load %arg4[%c0_10, %c0_11] : memref<16x32xf32, #tpu.memory_space<vmem>>, vector<16x32xf32>
    tpu.vector_store %arg4[%c0_10, %c0_11], %26 {strides = array<i32>} : memref<16x32xf32, #tpu.memory_space<vmem>>, vector<16x32xf32>,
    return
  }
  func.func @transform_0(%arg0: i32) -> (i32, i32) {
    %c0_i32 = arith.constant 0 : i32
    %c0_i32_0 = arith.constant 0 : i32
    return %arg0, %c0_i32 : i32, i32
  }
  func.func @transform_1(%arg0: i32) -> (i32, i32) {
    %c0_i32 = arith.constant 0 : i32
    %c0_i32_0 = arith.constant 0 : i32
    %c0_i32_1 = arith.constant 0 : i32
    return %c0_i32, %c0_i32_0 : i32, i32
  }
  func.func @transform_2(%arg0: i32) -> (i32, i32) {
    %c0_i32 = arith.constant 0 : i32
    %c0_i32_0 = arith.constant 0 : i32
    %c0_i32_1 = arith.constant 0 : i32
    return %c0_i32, %c0_i32_0 : i32, i32
  }
  func.func @transform_3(%arg0: i32) -> (i32, i32) {
    %c0_i32 = arith.constant 0 : i32
    %c0_i32_0 = arith.constant 0 : i32
    return %arg0, %c0_i32 : i32, i32
  }
}

</mosaic_0001>

<bundles_post_ra>
// kernel: tpu_custom_call.1
= control target key start
LH: loop header
LB: loop body
LE: loop exit
PB: predicated region body
PF: predicated region fallthrough
CT: control target
= control target key end

     0   :  { %8 = vsyncpa [#allocation3], 0  ;;  %s203_s0 = inlined_call_operand.hbm [shape: f32[16,32], index: 0, kind: input, shape index: {}]   ;;  %s204_s1 = inlined_call_operand.vmem [shape: f32[1,32], index: 1, kind: input, shape index: {}]   ;;  %s205_s2 = inlined_call_operand.vmem [shape: f32[1,32], index: 2, kind: input, shape index: {}]   ;;  %s206_s3 = inlined_call_operand.hbm [shape: f32[16,32], index: 3, kind: output, shape index: {}]  }
   0x1   :  { %9 = vsyncpa [#allocation4], 0  ;;  %s155_s12 = smov [#allocation2]  }
   0x2   :  { %s15_s13 = sshll.u32 %s155_s12, 4  ;;  %s16_s13 = int_to_ptr.vmem [resolvable:$true] %s15_s13 }
   0x3   :  { %s119_s14 = scalar_lea.vmem %s16_s13, 256  ;;  %p124_p1 = scmp.lt.s32.totalorder %s16_s13, %s16_s13 }
   0x4   :  { %p120_p0 = scmp.ne.s32.totalorder %s16_s13, %s119_s14  ;;  %p125_p2 = scmp.lt.s32.totalorder %s119_s14, %s119_s14 }
   0x6   :  { %p126_p3 = por %p125_p2, %p124_p1 }
   0x8   :  { %p127_p4 = pnand %p126_p3, %p120_p0 }
   0xa   :  { %130 = shalt.err (!%p127_p4)
}
   0xb   :  { %s156_s15 = smov 128   ;;  %s157_s16 = smov 8  }
   0xc   :  { %21 = dma.hbm_to_vmem [thread:$0]  %s203_s0, 256, %s16_s13, [#allocation3], %s156_s15, %s156_s15, %s157_s16  }
   0xd   :  { %151 = dma.done.wait [#allocation3], 256  }
   0xe   :  { %152 = vsyncadd [#allocation3], 4294967040  ;;  %vm31_vm0 = vcmask 261120   ;;  %v29_v0 = vld [vmem:[#allocation2] sm:$0xff]  ;;  %v30_v1 = vld [vmem:[#allocation2 + $0x8] sm:$0xff]  ;;  %s158_s22 = smov [#allocation5]  }
   0xf   :  { %v32_v2 = vsel %vm31_vm0, %v29_v0, 0.0  ;;  %v38_v3 = vmul.f32 %v29_v0, %v29_v0  ;;  %v39_v4 = vmul.f32 %v30_v1, %v30_v1  ;;  %v35_v6 = vsel %vm31_vm0, %v30_v1, 0.0  ;;  %v101_v26 = vld [vmem:[%s204_s1] ss:$0 sm:$0xff]  ;;  %s89_s23 = sshll.u32 %s158_s22, 4  ;;  %s90_s23 = int_to_ptr.vmem [resolvable:$true] %s89_s23 }
  0x10   :  { %33 = vadd.xlane.f32.xlu0 %v32_v2  ;;  %v102_v28 = vld [vmem:[%s205_s2] ss:$0 sm:$0xff]  ;;  %s131_s1 = scalar_lea.vmem %s90_s23, 256  ;;  %p136_p6 = scmp.lt.s32.totalorder %s90_s23, %s90_s23 }
  0x11   :  { %v40_v5 = vsel %vm31_vm0, %v38_v3, 0.0  ;;  %v43_v7 = vsel %vm31_vm0, %v39_v4, 0.0  ;;  %p132_p5 = scmp.ne.s32.totalorder %s90_s23, %s131_s1  ;;  %p137_p7 = scmp.lt.s32.totalorder %s131_s1, %s131_s1 }
  0x12   :  { %41 = vadd.xlane.f32.xlu1 %v40_v5 }
  0x13   :  { %p138_p8 = por %p137_p7, %p136_p6 }
  0x14   :  { %36 = vadd.xlane.f32.xlu0 %v35_v6 }
  0x15   :  { %p139_p9 = pnand %p138_p8, %p132_p5 }
  0x16   :  { %44 = vadd.xlane.f32.xlu1 %v43_v7 }
  0x99   :  { %v34_v8 = vpop.xlane.xlu0 %33 }
  0x9a   :  { %v46_v9 = vmul.f32 0.03125, %v34_v8 }
  0x9b   :  { %v42_v10 = vpop.xlane.xlu1 %41 }
  0x9c   :  { %v48_v11 = vmul.f32 %v46_v9, %v34_v8  ;;  %v62_v24 = vsub.f32 %v29_v0, %v46_v9 }
  0x9d   :  { %v37_v12 = vpop.xlane.xlu0 %36 }
  0x9e   :  { %v50_v13 = vsub.f32 %v42_v10, %v48_v11  ;;  %v47_v14 = vmul.f32 0.03125, %v37_v12 }
  0x9f   :  { %v45_v15 = vpop.xlane.xlu1 %44 }
  0xa0   :  { %v52_v16 = vmul.f32 0.032258064, %v50_v13  ;;  %v49_v17 = vmul.f32 %v47_v14, %v37_v12  ;;  %v63_v29 = vsub.f32 %v30_v1, %v47_v14 }
  0xa2   :  { %v54_v18 = vmax.f32 %v52_v16, 0.0  ;;  %v51_v19 = vsub.f32 %v45_v15, %v49_v17 }
  0xa4   :  { %v56_v20 = vadd.f32 1e-05, %v54_v18  ;;  %v53_v21 = vmul.f32 0.032258064, %v51_v19 }
  0xa6   :  { %107 = vrsqrt.f32 %v56_v20  ;;  %v55_v22 = vmax.f32 %v53_v21, 0.0 }
  0xa8   :  { %v57_v23 = vadd.f32 1e-05, %v55_v22 }
  0xaa   :  { %109 = vrsqrt.f32 %v57_v23 }
  0xb3   :  { %v108_v25 = vpop.eup %107 }
  0xb4   :  { %v64_v27 = vmul.f32 %v108_v25, %v62_v24 }
  0xb6   :  { %v72_v30 = vmul.f32 %v101_v26, %v64_v27 }
  0xb7   :  { %v110_v31 = vpop.eup %109 }
  0xb8   :  { %v65_v32 = vmul.f32 %v110_v31, %v63_v29  ;;  %v80_v33 = vadd.f32 %v102_v28, %v72_v30 }
  0xba   :  { %v73_v34 = vmul.f32 %v101_v26, %v65_v32  ;;  %82 = vst.msk [vmem:[#allocation5] sm:$0xff] %vm31_vm0, %v80_v33 }
  0xbc   :  { %v81_v35 = vadd.f32 %v102_v28, %v73_v34 }
  0xbe   :  { %83 = vst.msk [vmem:[#allocation5 + $0x8] sm:$0xff] %vm31_vm0, %v81_v35 }
  0xbf   :  { %142 = shalt.err (!%p139_p9)
}
  0xc0   :  { %95 = dma.vmem_to_hbm [thread:$0]  %s90_s23, 256, %s206_s3, [#allocation4], %s156_s15, %s156_s15, %s157_s16  }
  0xc1   :  { %153 = dma.done.wait [#allocation4], 256  }
  0xc2   :  { %154 = vsyncadd [#allocation4], 4294967040 }
  0xc3   :  { %99 = vsyncpa [#allocation3], 1 }
  0xc4   :  { %100 = vsyncpa [#allocation4], 1 }

</bundles_post_ra>
